<compile_context>
chip_gen: v6e
topology: v6e:2x2x1
jax: 0.10.0
libtpu: 0.0.40
codegen_flags: <defaults>
</compile_context>

<pallas_src>
import numpy as np
import jax
import jax.numpy as jnp
from jax.experimental import pallas as pl
from jax.experimental.pallas import tpu as pltpu

LANE = 128      # TPU lane width (last dim)
SUBLANE = 8     # f32 sublane width (second-to-last dim)
MAX_BLOCK_B = 256


def _round_up(x, m):
    return (x + m - 1) // m * m


# ---------------------------------------------------------------------------
# Pallas kernel: fused fc+ReLU -> convT#1(+folded upsample)+LeakyReLU -> convT#2+LeakyReLU
# z block is (BLOCK_B, Kp); all weight operands are whole, lane-dense VMEM slabs.
# ---------------------------------------------------------------------------
def decoder_kernel(z_ref, wfc_ref, bfc_ref, m1_ref, b1_ref, m2_ref, b2_ref, out_ref):
    # fc + ReLU : (BLOCK_B, Kp) @ (Kp, Hp) + (1, Hp)
    h = jnp.dot(z_ref[...], wfc_ref[...], preferred_element_type=jnp.float32)
    h = jnp.maximum(h + bfc_ref[...], 0.0)

    # ConvTranspose1d #1 (nearest-upsample folded into m1) + LeakyReLU(0.01)
    y1 = jnp.dot(h, m1_ref[...], preferred_element_type=jnp.float32) + b1_ref[...]
    y1 = jnp.where(y1 >= 0.0, y1, 0.01 * y1)

    # ConvTranspose1d #2 + LeakyReLU(0.01)
    y2 = jnp.dot(y1, m2_ref[...], preferred_element_type=jnp.float32) + b2_ref[...]
    out_ref[...] = jnp.where(y2 >= 0.0, y2, 0.01 * y2)


# ---------------------------------------------------------------------------
# Host-side (numpy) parameter preparation, done ONCE.
# ---------------------------------------------------------------------------
def build_convT_matrix_np(W, stride, L_in):
    """W: (Cin, Cout, K) PyTorch ConvTranspose1d weight (padding=0, output_padding=0,
    dilation=1, groups=1).  Returns dense M: (Cin*L_in, Cout*L_out) such that
    y_flat = x_flat @ M reproduces the conv-transpose (NCL row-major flatten)."""
    Cin, Cout, K = W.shape
    L_out = (L_in - 1) * stride + K
    M = np.zeros((Cin, L_in, Cout, L_out), dtype=np.float32)
    for i in range(L_in):
        for k in range(K):
            M[:, i, :, i * stride + k] += W[:, :, k]
    return M.reshape(Cin * L_in, Cout * L_out), L_out


def prepare_decoder_params(params, cfg):
    """Build padded, lane-dense constant operands for the fused kernel (host-side)."""
    H = cfg["hidden_dim"]
    U = cfg["upsample"]
    s1, s2 = cfg["strides"]

    Wfc = np.asarray(params["fc_w"], np.float32)      # (H, latent)  nn.Linear weight
    bfc = np.asarray(params["fc_b"], np.float32)      # (H,)
    W1 = np.asarray(params["ct1_w"], np.float32)      # (H, C1, K1)
    b1 = np.asarray(params["ct1_b"], np.float32)      # (C1,)
    W2 = np.asarray(params["ct2_w"], np.float32)      # (C1, C2, K2)
    b2 = np.asarray(params["ct2_b"], np.float32)      # (C2,)

    latent = Wfc.shape[1]
    C1, C2 = W1.shape[1], W2.shape[1]

    # Layer 1: input length after nearest upsample is U; fold the upsample
    # (broadcast of the length-1 input) by summing the U row-blocks.
    M1_full, L1 = build_convT_matrix_np(W1, s1, U)            # (H*U, C1*L1)
    M1 = M1_full.reshape(H, U, C1 * L1).sum(axis=1)           # (H, C1*L1)
    b1_exp = np.repeat(b1, L1)                                # (C1*L1,)

    # Layer 2
    M2, L2 = build_convT_matrix_np(W2, s2, L1)                # (C1*L1, C2*L2)
    b2_exp = np.repeat(b2, L2)                                # (C2*L2,)

    # Lane padding: every last dim -> multiple of 128 (zero pad, mathematically inert).
    Kp = _round_up(latent, LANE)
    Hp = _round_up(H, LANE)
    N1p = _round_up(C1 * L1, LANE)
    N2p = _round_up(C2 * L2, LANE)

    WfcT_p = np.zeros((Kp, Hp), np.float32); WfcT_p[:latent, :H] = Wfc.T
    bfc_p = np.zeros((1, Hp), np.float32);   bfc_p[0, :H] = bfc
    M1_p = np.zeros((Hp, N1p), np.float32);  M1_p[:H, :C1 * L1] = M1
    b1_p = np.zeros((1, N1p), np.float32);   b1_p[0, :C1 * L1] = b1_exp
    M2_p = np.zeros((N1p, N2p), np.float32); M2_p[:C1 * L1, :C2 * L2] = M2
    b2_p = np.zeros((1, N2p), np.float32);   b2_p[0, :C2 * L2] = b2_exp

    consts = tuple(jnp.asarray(a) for a in (WfcT_p, bfc_p, M1_p, b1_p, M2_p, b2_p))
    meta = dict(latent=latent, latent_pad=Kp, hidden_pad=Hp,
                C2=C2, L2=L2, n1_pad=N1p, n2_pad=N2p)
    return consts, meta


def make_decoder_forward(consts, meta):
    """Returns a jitted forward(z) -> (B, C2, L2).  Constants are captured once."""
    WfcT_p, bfc_p, M1_p, b1_p, M2_p, b2_p = consts
    Kp, Hp = meta["latent_pad"], meta["hidden_pad"]
    N1p, N2p = meta["n1_pad"], meta["n2_pad"]
    latent, C2, L2 = meta["latent"], meta["C2"], meta["L2"]

    @jax.jit
    def forward(z):
        B = z.shape[0]
        # Batch tiling: small batches -> one block; large batches -> 256-row blocks,
        # pipelined over a parallel grid axis (megacore-shardable).
        block_b = _round_up(B, SUBLANE) if B <= MAX_BLOCK_B else MAX_BLOCK_B
        Bp = _round_up(B, block_b)
        n_blocks = Bp // block_b

        z_pad = jnp.zeros((Bp, Kp), jnp.float32).at[:B, :latent].set(
            z.astype(jnp.float32))

        # Weights / biases: constant block index -> stay VMEM-resident across steps.
        w_spec = lambda shape: pl.BlockSpec(shape, lambda i: (0, 0))
        out_pad = pl.pallas_call(
            decoder_kernel,
            out_shape=jax.ShapeDtypeStruct((Bp, N2p), jnp.float32),
            grid=(n_blocks,),
            in_specs=[
                pl.BlockSpec((block_b, Kp), lambda i: (i, 0)),   # z blocks
                w_spec((Kp, Hp)),                                # fc weight (T)
                w_spec((1, Hp)),                                 # fc bias
                w_spec((Hp, N1p)),                               # convT#1 scatter
                w_spec((1, N1p)),                                # convT#1 bias
                w_spec((N1p, N2p)),                              # convT#2 scatter
                w_spec((1, N2p)),                                # convT#2 bias
            ],
            out_specs=pl.BlockSpec((block_b, N2p), lambda i: (i, 0)),
            compiler_params=pltpu.CompilerParams(
                dimension_semantics=("parallel",)),
        )(z_pad, WfcT_p, bfc_p, M1_p, b1_p, M2_p, b2_p)

        return out_pad[:B, :C2 * L2].reshape(B, C2, L2)

    return forward


# ---------------------------------------------------------------------------
# Independent numpy reference (direct ConvTranspose1d loops)
# ---------------------------------------------------------------------------
def ref_decoder(z, params, cfg):
    z = np.asarray(z, dtype=np.float64)
    Wfc = np.asarray(params["fc_w"], np.float64)
    bfc = np.asarray(params["fc_b"], np.float64)
    U = cfg["upsample"]
    h = np.maximum(z @ Wfc.T + bfc, 0.0)                      # (B, H)
    x = np.repeat(h[:, :, None], U, axis=2)                   # (B, H, U) nearest upsample
    layers = [
        (np.asarray(params["ct1_w"], np.float64), np.asarray(params["ct1_b"], np.float64), cfg["strides"][0]),
        (np.asarray(params["ct2_w"], np.float64), np.asarray(params["ct2_b"], np.float64), cfg["strides"][1]),
    ]
    for W, b, s in layers:
        Cin, Cout, K = W.shape
        B, _, Lin = x.shape
        Lout = (Lin - 1) * s + K
        y = np.zeros((B, Cout, Lout))
        for i in range(Lin):
            for k in range(K):
                y[:, :, i * s + k] += x[:, :, i] @ W[:, :, k]
        y += b[None, :, None]
        x = np.where(y >= 0.0, y, 0.01 * y)                   # LeakyReLU(0.01)
    return x


# ---------------------------------------------------------------------------
if __name__ == "__main__":
    cfg = dict(
        latent_dim=8,
        hidden_dim=16,
        filters=[8, 4],
        kernels=[3, 3],
        strides=[2, 1],
        upsample=4,
    )
    B = 2

    key = jax.random.PRNGKey(0)
    ks = jax.random.split(key, 8)
    latent, H = cfg["latent_dim"], cfg["hidden_dim"]
    C1, C2 = cfg["filters"]
    K1, K2 = cfg["kernels"]

    params = {
        "fc_w": 0.3 * jax.random.normal(ks[0], (H, latent), jnp.float32),   # nn.Linear weight (out, in)
        "fc_b": 0.1 * jax.random.normal(ks[1], (H,), jnp.float32),
        "ct1_w": 0.3 * jax.random.normal(ks[2], (H, C1, K1), jnp.float32),  # ConvTranspose1d (Cin, Cout, K)
        "ct1_b": 0.1 * jax.random.normal(ks[3], (C1,), jnp.float32),
        "ct2_w": 0.3 * jax.random.normal(ks[4], (C1, C2, K2), jnp.float32),
        "ct2_b": 0.1 * jax.random.normal(ks[5], (C2,), jnp.float32),
    }
    z = jax.random.normal(ks[6], (B, latent), jnp.float32)

    # One-time parameter prep (hoisted out of the per-call path), jitted forward.
    consts, meta = prepare_decoder_params(params, cfg)
    decoder_forward = make_decoder_forward(consts, meta)

    out = decoder_forward(z)
    out = jax.block_until_ready(out)

    ref = ref_decoder(z, params, cfg)
    assert out.shape == ref.shape, (out.shape, ref.shape)
    np.testing.assert_allclose(np.asarray(out), ref, rtol=1e-4, atol=1e-4)

    print("KERNEL_OK")
</pallas_src>

<mosaic_0001>
module attributes {stable_mosaic.version = 11 : i64} {
  func.func @decoder_kernel(%arg0: i32, %arg1: memref<8x128xf32, #tpu.memory_space<vmem>>, %arg2: memref<128x128xf32, #tpu.memory_space<vmem>>, %arg3: memref<1x128xf32, #tpu.memory_space<vmem>>, %arg4: memref<128x128xf32, #tpu.memory_space<vmem>>, %arg5: memref<1x128xf32, #tpu.memory_space<vmem>>, %arg6: memref<128x128xf32, #tpu.memory_space<vmem>>, %arg7: memref<1x128xf32, #tpu.memory_space<vmem>>, %arg8: memref<8x128xf32, #tpu.memory_space<vmem>>) attributes {dimension_semantics = [#tpu.dimension_semantics<parallel>], iteration_bounds = array<i64: 1>, scalar_prefetch = 0 : i64, scratch_operands = 0 : i64, tpu.core_type = #tpu.core_type<tc>, window_params = [{transform_indices = @transform_0, window_bounds = array<i64: 8, 128>}, {pipeline_mode = #tpu.pipeline_mode<synchronous>, transform_indices = @transform_1, window_bounds = array<i64: 128, 128>}, {pipeline_mode = #tpu.pipeline_mode<synchronous>, transform_indices = @transform_2, window_bounds = array<i64: 1, 128>}, {pipeline_mode = #tpu.pipeline_mode<synchronous>, transform_indices = @transform_3, window_bounds = array<i64: 128, 128>}, {pipeline_mode = #tpu.pipeline_mode<synchronous>, transform_indices = @transform_4, window_bounds = array<i64: 1, 128>}, {pipeline_mode = #tpu.pipeline_mode<synchronous>, transform_indices = @transform_5, window_bounds = array<i64: 128, 128>}, {pipeline_mode = #tpu.pipeline_mode<synchronous>, transform_indices = @transform_6, window_bounds = array<i64: 1, 128>}, {transform_indices = @transform_7, window_bounds = array<i64: 8, 128>}]} {
    %c0 = arith.constant 0 : index
    %c0_0 = arith.constant 0 : index
    %0 = vector.load %arg1[%c0, %c0_0] : memref<8x128xf32, #tpu.memory_space<vmem>>, vector<8x128xf32>
    %c0_1 = arith.constant 0 : index
    %c0_2 = arith.constant 0 : index
    %1 = vector.load %arg2[%c0_1, %c0_2] : memref<128x128xf32, #tpu.memory_space<vmem>>, vector<128x128xf32>
    %cst = arith.constant dense<0.000000e+00> : vector<8x128xf32>
    %2 = tpu.matmul %0, %1, %cst {dimension_numbers = #tpu.dot_dimension_numbers<[1], [0], [0], [1], [0, 0, 1, 1], [], []>} : vector<8x128xf32>, vector<128x128xf32>, vector<8x128xf32> -> vector<8x128xf32>
    %c0_3 = arith.constant 0 : index
    %c0_4 = arith.constant 0 : index
    %3 = vector.load %arg3[%c0_3, %c0_4] : memref<1x128xf32, #tpu.memory_space<vmem>>, vector<1x128xf32>
    %4 = vector.broadcast %3 : vector<1x128xf32> to vector<8x128xf32>
    %5 = arith.addf %2, %4 : vector<8x128xf32>
    %cst_5 = arith.constant 0.000000e+00 : f32
    %6 = vector.broadcast %cst_5 : f32 to vector<8x128xf32>
    %7 = arith.maximumf %5, %6 : vector<8x128xf32>
    %c0_6 = arith.constant 0 : index
    %c0_7 = arith.constant 0 : index
    %8 = vector.load %arg4[%c0_6, %c0_7] : memref<128x128xf32, #tpu.memory_space<vmem>>, vector<128x128xf32>
    %cst_8 = arith.constant dense<0.000000e+00> : vector<8x128xf32>
    %9 = tpu.matmul %7, %8, %cst_8 {dimension_numbers = #tpu.dot_dimension_numbers<[1], [0], [0], [1], [0, 0, 1, 1], [], []>} : vector<8x128xf32>, vector<128x128xf32>, vector<8x128xf32> -> vector<8x128xf32>
    %c0_9 = arith.constant 0 : index
    %c0_10 = arith.constant 0 : index
    %10 = vector.load %arg5[%c0_9, %c0_10] : memref<1x128xf32, #tpu.memory_space<vmem>>, vector<1x128xf32>
    %11 = vector.broadcast %10 : vector<1x128xf32> to vector<8x128xf32>
    %12 = arith.addf %9, %11 : vector<8x128xf32>
    %cst_11 = arith.constant 0.000000e+00 : f32
    %13 = vector.broadcast %cst_11 : f32 to vector<8x128xf32>
    %14 = arith.cmpf oge, %12, %13 : vector<8x128xf32>
    %cst_12 = arith.constant 0.00999999977 : f32
    %15 = vector.broadcast %cst_12 : f32 to vector<8x128xf32>
    %16 = arith.mulf %15, %12 : vector<8x128xf32>
    %17 = arith.select %14, %12, %16 : vector<8x128xi1>, vector<8x128xf32>
    %c0_13 = arith.constant 0 : index
    %c0_14 = arith.constant 0 : index
    %18 = vector.load %arg6[%c0_13, %c0_14] : memref<128x128xf32, #tpu.memory_space<vmem>>, vector<128x128xf32>
    %cst_15 = arith.constant dense<0.000000e+00> : vector<8x128xf32>
    %19 = tpu.matmul %17, %18, %cst_15 {dimension_numbers = #tpu.dot_dimension_numbers<[1], [0], [0], [1], [0, 0, 1, 1], [], []>} : vector<8x128xf32>, vector<128x128xf32>, vector<8x128xf32> -> vector<8x128xf32>
    %c0_16 = arith.constant 0 : index
    %c0_17 = arith.constant 0 : index
    %20 = vector.load %arg7[%c0_16, %c0_17] : memref<1x128xf32, #tpu.memory_space<vmem>>, vector<1x128xf32>
    %21 = vector.broadcast %20 : vector<1x128xf32> to vector<8x128xf32>
    %22 = arith.addf %19, %21 : vector<8x128xf32>
    %cst_18 = arith.constant 0.000000e+00 : f32
    %23 = vector.broadcast %cst_18 : f32 to vector<8x128xf32>
    %24 = arith.cmpf oge, %22, %23 : vector<8x128xf32>
    %cst_19 = arith.constant 0.00999999977 : f32
    %25 = vector.broadcast %cst_19 : f32 to vector<8x128xf32>
    %26 = arith.mulf %25, %22 : vector<8x128xf32>
    %27 = arith.select %24, %22, %26 : vector<8x128xi1>, vector<8x128xf32>
    %c0_20 = arith.constant 0 : index
    %c0_21 = arith.constant 0 : index
    %28 = vector.load %arg8[%c0_20, %c0_21] : memref<8x128xf32, #tpu.memory_space<vmem>>, vector<8x128xf32>
    tpu.vector_store %arg8[%c0_20, %c0_21], %27 {strides = array<i32>} : memref<8x128xf32, #tpu.memory_space<vmem>>, vector<8x128xf32>,
    return
  }
  func.func @transform_0(%arg0: i32) -> (i32, i32) {
    %c0_i32 = arith.constant 0 : i32
    %c0_i32_0 = arith.constant 0 : i32
    return %arg0, %c0_i32 : i32, i32
  }
  func.func @transform_1(%arg0: i32) -> (i32, i32) {
    %c0_i32 = arith.constant 0 : i32
    %c0_i32_0 = arith.constant 0 : i32
    %c0_i32_1 = arith.constant 0 : i32
    return %c0_i32, %c0_i32_0 : i32, i32
  }
  func.func @transform_2(%arg0: i32) -> (i32, i32) {
    %c0_i32 = arith.constant 0 : i32
    %c0_i32_0 = arith.constant 0 : i32
    %c0_i32_1 = arith.constant 0 : i32
    return %c0_i32, %c0_i32_0 : i32, i32
  }
  func.func @transform_3(%arg0: i32) -> (i32, i32) {
    %c0_i32 = arith.constant 0 : i32
    %c0_i32_0 = arith.constant 0 : i32
    %c0_i32_1 = arith.constant 0 : i32
    return %c0_i32, %c0_i32_0 : i32, i32
  }
  func.func @transform_4(%arg0: i32) -> (i32, i32) {
    %c0_i32 = arith.constant 0 : i32
    %c0_i32_0 = arith.constant 0 : i32
    %c0_i32_1 = arith.constant 0 : i32
    return %c0_i32, %c0_i32_0 : i32, i32
  }
  func.func @transform_5(%arg0: i32) -> (i32, i32) {
    %c0_i32 = arith.constant 0 : i32
    %c0_i32_0 = arith.constant 0 : i32
    %c0_i32_1 = arith.constant 0 : i32
    return %c0_i32, %c0_i32_0 : i32, i32
  }
  func.func @transform_6(%arg0: i32) -> (i32, i32) {
    %c0_i32 = arith.constant 0 : i32
    %c0_i32_0 = arith.constant 0 : i32
    %c0_i32_1 = arith.constant 0 : i32
    return %c0_i32, %c0_i32_0 : i32, i32
  }
  func.func @transform_7(%arg0: i32) -> (i32, i32) {
    %c0_i32 = arith.constant 0 : i32
    %c0_i32_0 = arith.constant 0 : i32
    return %arg0, %c0_i32 : i32, i32
  }
}

</mosaic_0001>

<bundles_post_ra>
// kernel: forward.1
= control target key start
LH: loop header
LB: loop body
LE: loop exit
PB: predicated region body
PF: predicated region fallthrough
CT: control target
= control target key end

     0   :  { %12 = vsyncpa [#allocation3], 0  ;;  %s716_s0 = inlined_call_operand.vmem [shape: f32[8,128], index: 0, kind: input, shape index: {}]   ;;  %s717_s1 = inlined_call_operand.hbm [shape: f32[128,128], index: 1, kind: input, shape index: {}]   ;;  %s718_s2 = inlined_call_operand.vmem [shape: f32[1,128], index: 2, kind: input, shape index: {}]   ;;  %s719_s3 = inlined_call_operand.hbm [shape: f32[128,128], index: 3, kind: input, shape index: {}]   ;;  %s720_s4 = inlined_call_operand.vmem [shape: f32[1,128], index: 4, kind: input, shape index: {}]   ;;  %s721_s5 = inlined_call_operand.hbm [shape: f32[128,128], index: 5, kind: input, shape index: {}]   ;;  %s722_s6 = inlined_call_operand.vmem [shape: f32[1,128], index: 6, kind: input, shape index: {}]   ;;  %s723_s7 = inlined_call_operand.vmem [shape: f32[8,128], index: 7, kind: output, shape index: {}]  }
   0x1   :  { %13 = vsyncpa [#allocation5], 0  ;;  %s591_s24 = smov [#allocation4]   ;;  %s592_s26 = smov [#allocation2]  }
   0x2   :  { %s35_s25 = sshll.u32 %s591_s24, 4  ;;  %s21_s27 = sshll.u32 %s592_s26, 4  ;;  %s36_s25 = int_to_ptr.vmem [resolvable:$true] %s35_s25  ;;  %s22_s27 = int_to_ptr.vmem [resolvable:$true] %s21_s27 }
   0x3   :  { %s535_s28 = scalar_lea.vmem %s36_s25, 2048  ;;  %p540_p1 = scmp.lt.s32.totalorder %s36_s25, %s36_s25 }
   0x4   :  { %p536_p0 = scmp.ne.s32.totalorder %s36_s25, %s535_s28  ;;  %p541_p2 = scmp.lt.s32.totalorder %s535_s28, %s535_s28 }
   0x6   :  { %p542_p3 = por %p541_p2, %p540_p1 }
   0x8   :  { %p543_p4 = pnand %p542_p3, %p536_p0 }
   0xa   :  { %546 = shalt.err (!%p543_p4)
}
   0xb   :  { %s593_s29 = smov 128   ;;  %s594_s30 = smov 8  }
   0xc   :  { %41 = dma.hbm_to_vmem [thread:$0]  %s719_s3, 2048, %s36_s25, [#allocation5], %s593_s29, %s593_s29, %s594_s30  }
   0xd   :  { %s555_s10 = scalar_lea.vmem %s22_s27, 2048  ;;  %p560_p6 = scmp.lt.s32.totalorder %s22_s27, %s22_s27 }
   0xe   :  { %p556_p5 = scmp.ne.s32.totalorder %s22_s27, %s555_s10  ;;  %p561_p7 = scmp.lt.s32.totalorder %s555_s10, %s555_s10 }
  0x10   :  { %p562_p8 = por %p561_p7, %p560_p6 }
  0x12   :  { %p563_p9 = pnand %p562_p8, %p556_p5 }
  0x14   :  { %566 = shalt.err (!%p563_p9)
}
  0x15   :  { %27 = dma.hbm_to_vmem [thread:$0]  %s717_s1, 2048, %s22_s27, [#allocation3], %s593_s29, %s593_s29, %s594_s30  }
  0x16   :  { %s595_s13 = smov [#allocation6]  }
  0x17   :  { %s49_s14 = sshll.u32 %s595_s13, 4  ;;  %s50_s14 = int_to_ptr.vmem [resolvable:$true] %s49_s14 }
  0x18   :  { %s575_s15 = scalar_lea.vmem %s50_s14, 2048  ;;  %p580_p11 = scmp.lt.s32.totalorder %s50_s14, %s50_s14 }
  0x19   :  { %p576_p10 = scmp.ne.s32.totalorder %s50_s14, %s575_s15  ;;  %p581_p12 = scmp.lt.s32.totalorder %s575_s15, %s575_s15 }
  0x1b   :  { %p582_p13 = por %p581_p12, %p580_p11 }
  0x1d   :  { %p583_p0 = pnand %p582_p13, %p576_p10 }
  0x1f   :  { %586 = shalt.err (!%p583_p0)
}
  0x20   :  { %55 = dma.hbm_to_vmem [thread:$0]  %s721_s5, 2048, %s50_s14, [#allocation5], %s593_s29, %s593_s29, %s594_s30  }
  0x21   :  { %587 = dma.done.wait [#allocation3], 2048  }
  0x22   :  { %588 = vsyncadd [#allocation3], 4294965248 }
  0x23   :  { %589 = dma.done.wait [#allocation5], 4096  }
  0x24   :  { %590 = vsyncadd [#allocation5], 4294963200  ;;  %v596_v0 = vmov 0.0   ;;  %vm597_vm0 = vmmov 0   ;;  %v83_v1 = vld [vmem:[#allocation2 + $0x78] sm:$0xff]  ;;  %v82_v2 = vld [vmem:[#allocation2 + $0x70] sm:$0xff] }
  0x25   :  { %415 = vmatprep.subr.mxu0 %v596_v0  ;;  %447 = vmatprep.mubr.msk.f32.mxu0 %vm597_vm0, %v596_v0  ;;  %v81_v3 = vld [vmem:[#allocation2 + $0x68] sm:$0xff]  ;;  %v80_v4 = vld [vmem:[#allocation2 + $0x60] sm:$0xff]  ;;  %v177_v5 = vld [vmem:[#allocation4 + $0x78] sm:$0xff] }
  0x26   :  { %450 = vmatprep.subr.mxu1 %v596_v0  ;;  %482 = vmatprep.mubr.msk.f32.mxu1 %vm597_vm0, %v596_v0  ;;  %v79_v6 = vld [vmem:[#allocation2 + $0x58] sm:$0xff]  ;;  %v176_v7 = vld [vmem:[#allocation4 + $0x70] sm:$0xff]  ;;  %v175_v8 = vld [vmem:[#allocation4 + $0x68] sm:$0xff] }
  0x27   :  { %416 = vmatpush3.msra.mxu0 %v83_v1  ;;  %451 = vmatpush3.msra.mxu1 %v177_v5  ;;  %v78_v9 = vld [vmem:[#allocation2 + $0x50] sm:$0xff]  ;;  %v174_v10 = vld [vmem:[#allocation4 + $0x60] sm:$0xff]  ;;  %v77_v11 = vld [vmem:[#allocation2 + $0x48] sm:$0xff] }
  0x28   :  { %417 = vmatprep.subr.mxu0 %v596_v0  ;;  %452 = vmatprep.subr.mxu1 %v596_v0  ;;  %v173_v12 = vld [vmem:[#allocation4 + $0x58] sm:$0xff]  ;;  %v76_v13 = vld [vmem:[#allocation2 + $0x40] sm:$0xff]  ;;  %v172_v14 = vld [vmem:[#allocation4 + $0x50] sm:$0xff] }
  0x29   :  { %418 = vmatpush3.msra.mxu0 %v82_v2  ;;  %453 = vmatpush3.msra.mxu1 %v176_v7  ;;  %v75_v15 = vld [vmem:[#allocation2 + $0x38] sm:$0xff]  ;;  %v171_v16 = vld [vmem:[#allocation4 + $0x48] sm:$0xff]  ;;  %v74_v17 = vld [vmem:[#allocation2 + $0x30] sm:$0xff] }
  0x2a   :  { %419 = vmatprep.subr.mxu0 %v596_v0  ;;  %454 = vmatprep.subr.mxu1 %v596_v0  ;;  %v170_v18 = vld [vmem:[#allocation4 + $0x40] sm:$0xff]  ;;  %v73_v19 = vld [vmem:[#allocation2 + $0x28] sm:$0xff]  ;;  %v169_v20 = vld [vmem:[#allocation4 + $0x38] sm:$0xff] }
  0x2b   :  { %420 = vmatpush3.msra.mxu0 %v81_v3  ;;  %455 = vmatpush3.msra.mxu1 %v175_v8  ;;  %v72_v21 = vld [vmem:[#allocation2 + $0x20] sm:$0xff]  ;;  %v168_v22 = vld [vmem:[#allocation4 + $0x30] sm:$0xff]  ;;  %v71_v23 = vld [vmem:[#allocation2 + $0x18] sm:$0xff] }
  0x2c   :  { %421 = vmatprep.subr.mxu0 %v596_v0  ;;  %456 = vmatprep.subr.mxu1 %v596_v0  ;;  %v167_v24 = vld [vmem:[#allocation4 + $0x28] sm:$0xff]  ;;  %v70_v25 = vld [vmem:[#allocation2 + $0x10] sm:$0xff]  ;;  %v166_v26 = vld [vmem:[#allocation4 + $0x20] sm:$0xff] }
  0x2d   :  { %422 = vmatpush3.msra.mxu0 %v80_v4  ;;  %457 = vmatpush3.msra.mxu1 %v174_v10  ;;  %v69_v27 = vld [vmem:[#allocation2 + $0x8] sm:$0xff]  ;;  %v165_v28 = vld [vmem:[#allocation4 + $0x18] sm:$0xff]  ;;  %v68_v29 = vld [vmem:[#allocation2] sm:$0xff] }
  0x2e   :  { %423 = vmatprep.subr.mxu0 %v596_v0  ;;  %458 = vmatprep.subr.mxu1 %v596_v0  ;;  %v67_v30 = vld [vmem:[%s716_s0] sm:$0xff]  ;;  %v164_v31 = vld [vmem:[#allocation4 + $0x10] sm:$0xff]  ;;  %v163_v32 = vld [vmem:[#allocation4 + $0x8] sm:$0xff] }
  0x2f   :  { %424 = vmatpush3.msra.mxu0 %v79_v6  ;;  %459 = vmatpush3.msra.mxu1 %v173_v12  ;;  %v162_v33 = vld [vmem:[#allocation4] sm:$0xff]  ;;  %v273_v34 = vld [vmem:[#allocation6 + $0x78] sm:$0xff]  ;;  %v272_v35 = vld [vmem:[#allocation6 + $0x70] sm:$0xff] }
  0x30   :  { %425 = vmatprep.subr.mxu0 %v596_v0  ;;  %460 = vmatprep.subr.mxu1 %v596_v0  ;;  %v271_v36 = vld [vmem:[#allocation6 + $0x68] sm:$0xff]  ;;  %v270_v37 = vld [vmem:[#allocation6 + $0x60] sm:$0xff]  ;;  %v269_v38 = vld [vmem:[#allocation6 + $0x58] sm:$0xff] }
  0x31   :  { %426 = vmatpush3.msra.mxu0 %v78_v9  ;;  %461 = vmatpush3.msra.mxu1 %v172_v14  ;;  %v268_v39 = vld [vmem:[#allocation6 + $0x50] sm:$0xff]  ;;  %v267_v40 = vld [vmem:[#allocation6 + $0x48] sm:$0xff]  ;;  %v266_v41 = vld [vmem:[#allocation6 + $0x40] sm:$0xff] }
  0x32   :  { %427 = vmatprep.subr.mxu0 %v596_v0  ;;  %462 = vmatprep.subr.mxu1 %v596_v0  ;;  %v265_v42 = vld [vmem:[#allocation6 + $0x38] sm:$0xff]  ;;  %v264_v43 = vld [vmem:[#allocation6 + $0x30] sm:$0xff]  ;;  %v263_v44 = vld [vmem:[#allocation6 + $0x28] sm:$0xff] }
  0x33   :  { %428 = vmatpush3.msra.mxu0 %v77_v11  ;;  %463 = vmatpush3.msra.mxu1 %v171_v16  ;;  %v262_v45 = vld [vmem:[#allocation6 + $0x20] sm:$0xff]  ;;  %v261_v46 = vld [vmem:[#allocation6 + $0x18] sm:$0xff]  ;;  %v260_v52 = vld [vmem:[#allocation6 + $0x10] sm:$0xff] }
  0x34   :  { %429 = vmatprep.subr.mxu0 %v596_v0  ;;  %464 = vmatprep.subr.mxu1 %v596_v0  ;;  %v361_v47 = vld [vmem:[%s718_s2] ss:$0 sm:$0xff]  ;;  %v259_v53 = vld [vmem:[#allocation6 + $0x8] sm:$0xff] }
  0x35   :  { %430 = vmatpush3.msra.mxu0 %v76_v13  ;;  %465 = vmatpush3.msra.mxu1 %v170_v18  ;;  %v258_v54 = vld [vmem:[#allocation6] sm:$0xff] }
  0x36   :  { %431 = vmatprep.subr.mxu0 %v596_v0  ;;  %466 = vmatprep.subr.mxu1 %v596_v0  ;;  %v362_v55 = vld [vmem:[%s720_s4] ss:$0 sm:$0xff] }
  0x37   :  { %432 = vmatpush3.msra.mxu0 %v75_v15  ;;  %467 = vmatpush3.msra.mxu1 %v169_v20  ;;  %v363_v61 = vld [vmem:[%s722_s6] ss:$0 sm:$0xff] }
  0x38   :  { %433 = vmatprep.subr.mxu0 %v596_v0  ;;  %468 = vmatprep.subr.mxu1 %v596_v0 }
  0x39   :  { %434 = vmatpush3.msra.mxu0 %v74_v17  ;;  %469 = vmatpush3.msra.mxu1 %v168_v22 }
  0x3a   :  { %435 = vmatprep.subr.mxu0 %v596_v0  ;;  %470 = vmatprep.subr.mxu1 %v596_v0 }
  0x3b   :  { %436 = vmatpush3.msra.mxu0 %v73_v19  ;;  %471 = vmatpush3.msra.mxu1 %v167_v24 }
  0x3c   :  { %437 = vmatprep.subr.mxu0 %v596_v0  ;;  %472 = vmatprep.subr.mxu1 %v596_v0 }
  0x3d   :  { %438 = vmatpush3.msra.mxu0 %v72_v21  ;;  %473 = vmatpush3.msra.mxu1 %v166_v26 }
  0x3e   :  { %439 = vmatprep.subr.mxu0 %v596_v0  ;;  %474 = vmatprep.subr.mxu1 %v596_v0 }
  0x3f   :  { %440 = vmatpush3.msra.mxu0 %v71_v23  ;;  %475 = vmatpush3.msra.mxu1 %v165_v28 }
  0x40   :  { %441 = vmatprep.subr.mxu0 %v596_v0  ;;  %476 = vmatprep.subr.mxu1 %v596_v0 }
  0x41   :  { %442 = vmatpush3.msra.mxu0 %v70_v25  ;;  %477 = vmatpush3.msra.mxu1 %v164_v31 }
  0x42   :  { %443 = vmatprep.subr.mxu0 %v596_v0  ;;  %478 = vmatprep.subr.mxu1 %v596_v0 }
  0x43   :  { %444 = vmatpush3.msra.mxu0 %v69_v27  ;;  %479 = vmatpush3.msra.mxu1 %v163_v32 }
  0x44   :  { %445 = vmatprep.subr.mxu0 %v596_v0  ;;  %480 = vmatprep.subr.mxu1 %v596_v0 }
  0x45   :  { %446 = vmatpush3.msra.mxu0 %v68_v29  ;;  %481 = vmatpush3.msra.mxu1 %v162_v33 }
  0x46   :  { %448 = vmatmul.mubr.f32.vlgmr.msra.gmra.mxu0 %v67_v30  ;;  %485 = vmatprep.subr.mxu0 %v596_v0 }
  0x47   :  { %517 = vmatprep.mubr.msk.f32.mxu0 %vm597_vm0, %v596_v0  ;;  %486 = vmatpush3.msra.mxu0 %v273_v34 }
  0x48   :  { %487 = vmatprep.subr.mxu0 %v596_v0 }
  0x49   :  { %488 = vmatpush3.msra.mxu0 %v272_v35 }
  0x4a   :  { %489 = vmatprep.subr.mxu0 %v596_v0 }
  0x4b   :  { %490 = vmatpush3.msra.mxu0 %v271_v36 }
  0x4c   :  { %491 = vmatprep.subr.mxu0 %v596_v0 }
  0x4d   :  { %492 = vmatpush3.msra.mxu0 %v270_v37 }
  0x4e   :  { %493 = vmatprep.subr.mxu0 %v596_v0 }
  0x4f   :  { %494 = vmatpush3.msra.mxu0 %v269_v38 }
  0x50   :  { %495 = vmatprep.subr.mxu0 %v596_v0 }
  0x51   :  { %496 = vmatpush3.msra.mxu0 %v268_v39 }
  0x52   :  { %497 = vmatprep.subr.mxu0 %v596_v0 }
  0x53   :  { %498 = vmatpush3.msra.mxu0 %v267_v40 }
  0x54   :  { %499 = vmatprep.subr.mxu0 %v596_v0 }
  0x55   :  { %500 = vmatpush3.msra.mxu0 %v266_v41 }
  0x56   :  { %501 = vmatprep.subr.mxu0 %v596_v0 }
  0x57   :  { %502 = vmatpush3.msra.mxu0 %v265_v42 }
  0x58   :  { %503 = vmatprep.subr.mxu0 %v596_v0 }
  0x59   :  { %504 = vmatpush3.msra.mxu0 %v264_v43 }
  0x5a   :  { %505 = vmatprep.subr.mxu0 %v596_v0 }
  0x5b   :  { %506 = vmatpush3.msra.mxu0 %v263_v44 }
  0x5c   :  { %507 = vmatprep.subr.mxu0 %v596_v0 }
  0x5d   :  { %508 = vmatpush3.msra.mxu0 %v262_v45 }
  0x5e   :  { %509 = vmatprep.subr.mxu0 %v596_v0 }
  0x5f   :  { %510 = vmatpush3.msra.mxu0 %v261_v46 }
  0x60   :  { %511 = vmatprep.subr.mxu0 %v596_v0 }
  0x61   :  { %512 = vmatpush3.msra.mxu0 %v260_v52 }
  0x62   :  { %513 = vmatprep.subr.mxu0 %v596_v0 }
  0x63   :  { %514 = vmatpush3.msra.mxu0 %v259_v53 }
  0x64   :  { %515 = vmatprep.subr.mxu0 %v596_v0 }
  0x65   :  { %516 = vmatpush3.msra.mxu0 %v258_v54 }
 0x106   :  { %v157_v48 = vpop.f32.mrf.mxu0 }
 0x107   :  { %v158_v49 = vadd.f32 %v361_v47, %v157_v48 }
 0x108   :  { %v449_v50 = vpop.f32.mrf.mxu0 }
 0x109   :  { %v161_v51 = vmax.f32 %v158_v49, 0.0 }
 0x10b   :  { %483 = vmatmul.mubr.f32.vlgmr.msra.gmra.mxu1 %v161_v51 }
 0x1cb   :  { %v251_v56 = vpop.f32.mrf.mxu1 }
 0x1cc   :  { %v252_v57 = vadd.f32 %v362_v55, %v251_v56 }
 0x1cd   :  { %v484_v58 = vpop.f32.mrf.mxu1 }
 0x1ce   :  { %vm255_vm1 = vcmp.ge.f32.partialorder %v252_v57, 0.0  ;;  %v256_v59 = vmul.f32 0.01, %v252_v57 }
 0x1d0   :  { %v257_v60 = vsel %vm255_vm1, %v252_v57, %v256_v59 }
 0x1d1   :  { %518 = vmatmul.mubr.f32.vlgmr.msra.gmra.mxu0 %v257_v60 }
 0x291   :  { %v347_v62 = vpop.f32.mrf.mxu0 }
 0x292   :  { %v348_v63 = vadd.f32 %v363_v61, %v347_v62 }
 0x293   :  { %v519_v1 = vpop.f32.mrf.mxu0 }
 0x294   :  { %vm351_vm2 = vcmp.ge.f32.partialorder %v348_v63, 0.0  ;;  %v352_v0 = vmul.f32 0.01, %v348_v63 }
 0x296   :  { %v353_v2 = vsel %vm351_vm2, %v348_v63, %v352_v0 }
 0x297   :  { %354 = vst [vmem:[%s723_s7] sm:$0xff] %v353_v2 }
 0x298   :  { %359 = vsyncpa [#allocation3], 1 }
 0x299   :  { %360 = vsyncpa [#allocation5], 1 }

</bundles_post_ra>
